<compile_context>
chip_gen: v7x
topology: tpu7x:2x2x1
jax: 0.10.0
libtpu: 0.0.40
codegen_flags: <defaults>
</compile_context>

<pallas_src>
import functools

import jax
import jax.numpy as jnp
from jax.experimental import pallas as pl
from jax.experimental.pallas import tpu as pltpu

IN_F = 28 * 28            # 784
H1, H2, OUT_F = 600, 128, 10
H1_P, OUT_P = 640, 128    # lane-padded widths (multiples of 128)


def _round_up(x, m):
    return (x + m - 1) // m * m


def _mlp_kernel(x_ref, w1_ref, b1_ref, w2_ref, b2_ref, w3_ref, b3_ref, o_ref):
    # bf16 MXU inputs, f32 accumulation, f32 bias adds, ReLU after every layer
    # (the original PyTorch module really does have ReLU after the last Linear).
    x = x_ref[...]                                                    # (TB, 784) bf16
    h1 = jnp.dot(x, w1_ref[...], preferred_element_type=jnp.float32) + b1_ref[...]
    h1 = jnp.maximum(h1, 0.0).astype(jnp.bfloat16)                    # (TB, 640)
    h2 = jnp.dot(h1, w2_ref[...], preferred_element_type=jnp.float32) + b2_ref[...]
    h2 = jnp.maximum(h2, 0.0).astype(jnp.bfloat16)                    # (TB, 128)
    h3 = jnp.dot(h2, w3_ref[...], preferred_element_type=jnp.float32) + b3_ref[...]
    o_ref[...] = jnp.maximum(h3, 0.0).astype(o_ref.dtype)             # (TB, 128) lane-dense


def _prepare_params(params):
    """Zero-pad logical (in, out) weights to lane multiples; cast weights to bf16.

    Zero padding is numerically exact through ReLU; padded output columns are
    sliced off in the wrapper before anything downstream sees them.
    """
    w1, b1, w2, b2, w3, b3 = params
    w1p = jnp.zeros((IN_F, H1_P), jnp.bfloat16).at[:, :H1].set(w1.astype(jnp.bfloat16))
    b1p = jnp.zeros((1, H1_P), jnp.float32).at[:, :H1].set(b1.astype(jnp.float32))
    w2p = jnp.zeros((H1_P, H2), jnp.bfloat16).at[:H1, :].set(w2.astype(jnp.bfloat16))
    b2p = b2.astype(jnp.float32)
    w3p = jnp.zeros((H2, OUT_P), jnp.bfloat16).at[:, :OUT_F].set(w3.astype(jnp.bfloat16))
    b3p = jnp.zeros((1, OUT_P), jnp.float32).at[:, :OUT_F].set(b3.astype(jnp.float32))
    return w1p, b1p, w2p, b2p, w3p, b3p


@functools.partial(jax.jit, static_argnames=())
def ann_forward(x_nchw, params):
    """Forward pass of the ANN module. x_nchw: (B, 1, 28, 28) float32."""
    w1p, b1p, w2p, b2p, w3p, b3p = _prepare_params(params)

    B = x_nchw.shape[0]
    # nn.Flatten(): (B, 1, 28, 28) -> (B, 784); cast activations to bf16.
    x = x_nchw.reshape(B, IN_F).astype(jnp.bfloat16)

    # Batch tile: up to 256 rows per grid step, multiple of 8 sublanes.
    TB = min(256, _round_up(B, 8))
    B_pad = _round_up(B, TB)
    if B_pad != B:
        x = jnp.pad(x, ((0, B_pad - B), (0, 0)))

    grid = (B_pad // TB,)

    def resident(shape):
        # Full-array block, constant block index -> stays in VMEM across steps.
        return pl.BlockSpec(shape, lambda i: (0, 0))

    flops = 2 * B_pad * (IN_F * H1_P + H1_P * H2 + H2 * OUT_P)
    bytes_accessed = (
        B_pad * IN_F * 2                                    # x (bf16)
        + (IN_F * H1_P + H1_P * H2 + H2 * OUT_P) * 2        # weights (bf16)
        + (H1_P + H2 + OUT_P) * 4                           # biases (f32)
        + B_pad * OUT_P * 4                                 # output (f32)
    )

    out = pl.pallas_call(
        _mlp_kernel,
        out_shape=jax.ShapeDtypeStruct((B_pad, OUT_P), jnp.float32),
        grid=grid,
        in_specs=[
            pl.BlockSpec((TB, IN_F), lambda i: (i, 0)),     # x tiles stream per step
            resident((IN_F, H1_P)),
            resident((1, H1_P)),
            resident((H1_P, H2)),
            resident((1, H2)),
            resident((H2, OUT_P)),
            resident((1, OUT_P)),
        ],
        out_specs=pl.BlockSpec((TB, OUT_P), lambda i: (i, 0)),
        compiler_params=pltpu.CompilerParams(
            dimension_semantics=("parallel",),              # 2 TCs on v7x
        ),
        cost_estimate=pl.CostEstimate(
            flops=flops, transcendentals=0, bytes_accessed=bytes_accessed),
    )(x, w1p, b1p, w2p, b2p, w3p, b3p)

    # Drop batch padding and the padded logit columns.
    return out[:B, :OUT_F]
    # TODO(synk): optional int8 weight path for w1 on v6e (int MXU); not portable to v7x.


def init_params(key):
    """Deterministic synthetic parameters matching nn.Linear fan-in init.

    Stored as (in, out) so the kernel computes x @ W (PyTorch stores (out, in))."""
    ks = jax.random.split(key, 6)

    def lin(kw, kb, fan_in, fan_out):
        bound = 1.0 / jnp.sqrt(fan_in)
        w = jax.random.uniform(kw, (fan_in, fan_out), jnp.float32, -bound, bound)
        b = jax.random.uniform(kb, (1, fan_out), jnp.float32, -bound, bound)
        return w, b

    w1, b1 = lin(ks[0], ks[1], IN_F, H1)
    w2, b2 = lin(ks[2], ks[3], H1, H2)
    w3, b3 = lin(ks[4], ks[5], H2, OUT_F)
    return (w1, b1, w2, b2, w3, b3)


def _reference(x_nchw, params):
    # Same bf16-input / f32-accumulation math as the kernel, in plain JAX.
    w1p, b1p, w2p, b2p, w3p, b3p = _prepare_params(params)
    x = x_nchw.reshape(x_nchw.shape[0], IN_F).astype(jnp.bfloat16)
    h = jnp.maximum(jnp.dot(x, w1p, preferred_element_type=jnp.float32) + b1p, 0.0)
    h = jnp.maximum(jnp.dot(h.astype(jnp.bfloat16), w2p,
                            preferred_element_type=jnp.float32) + b2p, 0.0)
    o = jnp.maximum(jnp.dot(h.astype(jnp.bfloat16), w3p,
                            preferred_element_type=jnp.float32) + b3p, 0.0)
    return o[:, :OUT_F]


if __name__ == "__main__":
    key = jax.random.PRNGKey(0)
    k_x, k_p = jax.random.split(key)
    # Small batch, Fashion-MNIST-shaped input (NCHW like PyTorch).
    x = jax.random.normal(k_x, (8, 1, 28, 28), jnp.float32)
    params = init_params(k_p)

    out = ann_forward(x, params)
    out = jax.block_until_ready(out)

    ref = _reference(x, params)
    assert out.shape == (8, 10), out.shape
    assert jnp.allclose(out, ref, atol=1e-2, rtol=1e-2), float(jnp.max(jnp.abs(out - ref)))
    print("KERNEL_OK")
</pallas_src>

<mosaic_0001>
module attributes {stable_mosaic.version = 11 : i64} {
  func.func @_mlp_kernel(%arg0: i32, %arg1: memref<8x784xbf16, #tpu.memory_space<vmem>>, %arg2: memref<784x640xbf16, #tpu.memory_space<vmem>>, %arg3: memref<1x640xf32, #tpu.memory_space<vmem>>, %arg4: memref<640x128xbf16, #tpu.memory_space<vmem>>, %arg5: memref<1x128xf32, #tpu.memory_space<vmem>>, %arg6: memref<128x128xbf16, #tpu.memory_space<vmem>>, %arg7: memref<1x128xf32, #tpu.memory_space<vmem>>, %arg8: memref<8x128xf32, #tpu.memory_space<vmem>>) attributes {dimension_semantics = [#tpu.dimension_semantics<parallel>], iteration_bounds = array<i64: 1>, scalar_prefetch = 0 : i64, scratch_operands = 0 : i64, tpu.core_type = #tpu.core_type<tc>, window_params = [{transform_indices = @transform_0, window_bounds = array<i64: 8, 784>}, {pipeline_mode = #tpu.pipeline_mode<synchronous>, transform_indices = @transform_1, window_bounds = array<i64: 784, 640>}, {pipeline_mode = #tpu.pipeline_mode<synchronous>, transform_indices = @transform_2, window_bounds = array<i64: 1, 640>}, {pipeline_mode = #tpu.pipeline_mode<synchronous>, transform_indices = @transform_3, window_bounds = array<i64: 640, 128>}, {pipeline_mode = #tpu.pipeline_mode<synchronous>, transform_indices = @transform_4, window_bounds = array<i64: 1, 128>}, {pipeline_mode = #tpu.pipeline_mode<synchronous>, transform_indices = @transform_5, window_bounds = array<i64: 128, 128>}, {pipeline_mode = #tpu.pipeline_mode<synchronous>, transform_indices = @transform_6, window_bounds = array<i64: 1, 128>}, {transform_indices = @transform_7, window_bounds = array<i64: 8, 128>}]} {
    %c0 = arith.constant 0 : index
    %c0_0 = arith.constant 0 : index
    %0 = vector.load %arg1[%c0, %c0_0] : memref<8x784xbf16, #tpu.memory_space<vmem>>, vector<8x784xbf16>
    %c0_1 = arith.constant 0 : index
    %c0_2 = arith.constant 0 : index
    %1 = vector.load %arg2[%c0_1, %c0_2] : memref<784x640xbf16, #tpu.memory_space<vmem>>, vector<784x640xbf16>
    %cst = arith.constant dense<0.000000e+00> : vector<8x640xf32>
    %2 = tpu.matmul %0, %1, %cst {dimension_numbers = #tpu.dot_dimension_numbers<[1], [0], [0], [1], [0, 0, 1, 1], [], []>} : vector<8x784xbf16>, vector<784x640xbf16>, vector<8x640xf32> -> vector<8x640xf32>
    %c0_3 = arith.constant 0 : index
    %c0_4 = arith.constant 0 : index
    %3 = vector.load %arg3[%c0_3, %c0_4] : memref<1x640xf32, #tpu.memory_space<vmem>>, vector<1x640xf32>
    %4 = vector.broadcast %3 : vector<1x640xf32> to vector<8x640xf32>
    %5 = arith.addf %2, %4 : vector<8x640xf32>
    %cst_5 = arith.constant 0.000000e+00 : f32
    %6 = vector.broadcast %cst_5 : f32 to vector<8x640xf32>
    %7 = arith.maximumf %5, %6 : vector<8x640xf32>
    %8 = arith.truncf %7 : vector<8x640xf32> to vector<8x640xbf16>
    %c0_6 = arith.constant 0 : index
    %c0_7 = arith.constant 0 : index
    %9 = vector.load %arg4[%c0_6, %c0_7] : memref<640x128xbf16, #tpu.memory_space<vmem>>, vector<640x128xbf16>
    %cst_8 = arith.constant dense<0.000000e+00> : vector<8x128xf32>
    %10 = tpu.matmul %8, %9, %cst_8 {dimension_numbers = #tpu.dot_dimension_numbers<[1], [0], [0], [1], [0, 0, 1, 1], [], []>} : vector<8x640xbf16>, vector<640x128xbf16>, vector<8x128xf32> -> vector<8x128xf32>
    %c0_9 = arith.constant 0 : index
    %c0_10 = arith.constant 0 : index
    %11 = vector.load %arg5[%c0_9, %c0_10] : memref<1x128xf32, #tpu.memory_space<vmem>>, vector<1x128xf32>
    %12 = vector.broadcast %11 : vector<1x128xf32> to vector<8x128xf32>
    %13 = arith.addf %10, %12 : vector<8x128xf32>
    %cst_11 = arith.constant 0.000000e+00 : f32
    %14 = vector.broadcast %cst_11 : f32 to vector<8x128xf32>
    %15 = arith.maximumf %13, %14 : vector<8x128xf32>
    %16 = arith.truncf %15 : vector<8x128xf32> to vector<8x128xbf16>
    %c0_12 = arith.constant 0 : index
    %c0_13 = arith.constant 0 : index
    %17 = vector.load %arg6[%c0_12, %c0_13] : memref<128x128xbf16, #tpu.memory_space<vmem>>, vector<128x128xbf16>
    %cst_14 = arith.constant dense<0.000000e+00> : vector<8x128xf32>
    %18 = tpu.matmul %16, %17, %cst_14 {dimension_numbers = #tpu.dot_dimension_numbers<[1], [0], [0], [1], [0, 0, 1, 1], [], []>} : vector<8x128xbf16>, vector<128x128xbf16>, vector<8x128xf32> -> vector<8x128xf32>
    %c0_15 = arith.constant 0 : index
    %c0_16 = arith.constant 0 : index
    %19 = vector.load %arg7[%c0_15, %c0_16] : memref<1x128xf32, #tpu.memory_space<vmem>>, vector<1x128xf32>
    %20 = vector.broadcast %19 : vector<1x128xf32> to vector<8x128xf32>
    %21 = arith.addf %18, %20 : vector<8x128xf32>
    %cst_17 = arith.constant 0.000000e+00 : f32
    %22 = vector.broadcast %cst_17 : f32 to vector<8x128xf32>
    %23 = arith.maximumf %21, %22 : vector<8x128xf32>
    %c0_18 = arith.constant 0 : index
    %c0_19 = arith.constant 0 : index
    %24 = vector.load %arg8[%c0_18, %c0_19] : memref<8x128xf32, #tpu.memory_space<vmem>>, vector<8x128xf32>
    tpu.vector_store %arg8[%c0_18, %c0_19], %23 {strides = array<i32>} : memref<8x128xf32, #tpu.memory_space<vmem>>, vector<8x128xf32>,
    return
  }
  func.func @transform_0(%arg0: i32) -> (i32, i32) {
    %c0_i32 = arith.constant 0 : i32
    %c0_i32_0 = arith.constant 0 : i32
    return %arg0, %c0_i32 : i32, i32
  }
  func.func @transform_1(%arg0: i32) -> (i32, i32) {
    %c0_i32 = arith.constant 0 : i32
    %c0_i32_0 = arith.constant 0 : i32
    %c0_i32_1 = arith.constant 0 : i32
    return %c0_i32, %c0_i32_0 : i32, i32
  }
  func.func @transform_2(%arg0: i32) -> (i32, i32) {
    %c0_i32 = arith.constant 0 : i32
    %c0_i32_0 = arith.constant 0 : i32
    %c0_i32_1 = arith.constant 0 : i32
    return %c0_i32, %c0_i32_0 : i32, i32
  }
  func.func @transform_3(%arg0: i32) -> (i32, i32) {
    %c0_i32 = arith.constant 0 : i32
    %c0_i32_0 = arith.constant 0 : i32
    %c0_i32_1 = arith.constant 0 : i32
    return %c0_i32, %c0_i32_0 : i32, i32
  }
  func.func @transform_4(%arg0: i32) -> (i32, i32) {
    %c0_i32 = arith.constant 0 : i32
    %c0_i32_0 = arith.constant 0 : i32
    %c0_i32_1 = arith.constant 0 : i32
    return %c0_i32, %c0_i32_0 : i32, i32
  }
  func.func @transform_5(%arg0: i32) -> (i32, i32) {
    %c0_i32 = arith.constant 0 : i32
    %c0_i32_0 = arith.constant 0 : i32
    %c0_i32_1 = arith.constant 0 : i32
    return %c0_i32, %c0_i32_0 : i32, i32
  }
  func.func @transform_6(%arg0: i32) -> (i32, i32) {
    %c0_i32 = arith.constant 0 : i32
    %c0_i32_0 = arith.constant 0 : i32
    %c0_i32_1 = arith.constant 0 : i32
    return %c0_i32, %c0_i32_0 : i32, i32
  }
  func.func @transform_7(%arg0: i32) -> (i32, i32) {
    %c0_i32 = arith.constant 0 : i32
    %c0_i32_0 = arith.constant 0 : i32
    return %arg0, %c0_i32 : i32, i32
  }
}

</mosaic_0001>

<bundles_post_ra>
// kernel: ann_forward.1
= control target key start
LH: loop header
LB: loop body
LE: loop exit
PB: predicated region body
PF: predicated region fallthrough
CT: control target
= control target key end

     0   :  { %v3663_v2 = vmov 0   ;;  %vm1651_vm0 = vcmask 130048   ;;  %s4716_s0 = inlined_call_operand.vmem [shape: bf16[8,784], index: 0, kind: input, shape index: {}]   ;;  %s4717_s1 = inlined_call_operand.vmem [shape: bf16[784,640], index: 1, kind: input, shape index: {}]   ;;  %s4718_s2 = inlined_call_operand.vmem [shape: f32[1,640], index: 2, kind: input, shape index: {}]   ;;  %s4719_s3 = inlined_call_operand.vmem [shape: bf16[640,128], index: 3, kind: input, shape index: {}]   ;;  %s4720_s4 = inlined_call_operand.vmem [shape: f32[1,128], index: 4, kind: input, shape index: {}]   ;;  %s4721_s5 = inlined_call_operand.vmem [shape: bf16[128,128], index: 5, kind: input, shape index: {}]   ;;  %s4722_s6 = inlined_call_operand.vmem [shape: f32[1,128], index: 6, kind: input, shape index: {}]   ;;  %s4723_s7 = inlined_call_operand.hbm [shape: f32[8,128], index: 7, kind: output, shape index: {}]  }
   0x1   :  { %v3240_v0 = vld [vmem:[%s4717_s1 + $0x4] ss:$20 sps:$4 sm:$0xff]   ;;  %1810 = vmatprep.mubr.bf16.mxu1 %v3663_v2  ;;  %v3244_v3 = vld [vmem:[%s4717_s1] ss:$20 sps:$4 sm:$0xff]   ;;  %v3248_v6 = vld [vmem:[%s4717_s1 + $0x8] ss:$20 sps:$4 sm:$0xff]  }
   0x2   :  { %v3242_v1 = vld [vmem:[%s4717_s1 + $0x784] ss:$20 sps:$4 sm:$0xff]   ;;  %1655 = vmatprep.subr.bf16.mxu0 %v3240_v0  ;;  %v3245_v4 = vld [vmem:[%s4717_s1 + $0x780] ss:$20 sps:$4 sm:$0xff]   ;;  %v3251_v8 = vld [vmem:[%s4717_s1 + $0x28] ss:$20 sps:$4 sm:$0xff]  }
   0x3   :  { %1778 = vmatprep.subr.bf16.mxu1 %v3242_v1  ;;  %v3246_v5 = vld [vmem:[%s4717_s1 + $0x2c] ss:$20 sps:$4 sm:$0xff]   ;;  %1656 = vmatpush1.bf16.msra.mxu0 %v3244_v3  ;;  %v3252_v9 = vld [vmem:[%s4716_s0 + $0x18] ss:$0 sps:$4 sm:$0xff]   ;;  %v3253_v10 = vld [vmem:[%s4717_s1 + $0x54] ss:$20 sps:$4 sm:$0xff]  }
   0x4   :  { %1779 = vmatpush1.bf16.msra.mxu1 %v3245_v4  ;;  %v3250_v7 = vld [vmem:[%s4717_s1 + $0xc] ss:$20 sps:$4 sm:$0xff]   ;;  %1657 = vmatprep.subr.bf16.mxu0 %v3246_v5  ;;  %v3255_v11 = vld [vmem:[%s4717_s1 + $0x30] ss:$20 sps:$4 sm:$0xff]   ;;  %v3257_v12 = vld [vmem:[%s4717_s1 + $0x34] ss:$20 sps:$4 sm:$0xff]  }
   0x5   :  { %1819 = vmatprep.subr.bf16.mxu1 %v3250_v7  ;;  %v3258_v13 = vld [vmem:[%s4717_s1 + $0x50] ss:$20 sps:$4 sm:$0xff]   ;;  %v3261_v16 = vld [vmem:[%s4717_s1 + $0x58] ss:$20 sps:$4 sm:$0xff]   ;;  %v3267_v20 = vld [vmem:[%s4717_s1 + $0x80] ss:$20 sps:$4 sm:$0xff]  }
   0x6   :  { %v3259_v14 = vld [vmem:[%s4717_s1 + $0x7c] ss:$20 sps:$4 sm:$0xff]   ;;  %v3264_v17 = vld [vmem:[%s4717_s1 + $0x78] ss:$20 sps:$4 sm:$0xff]   ;;  %v3270_v21 = vld [vmem:[%s4717_s1 + $0xa0] ss:$20 sps:$4 sm:$0xff]  }
   0x7   :  { %2981 = vmatmul.mubr.msk.bf16.vlgmr.msra.gmra.mrb[0].mxu1 %vm1651_vm0, %v3252_v9  ;;  %1658 = vmatpush1.bf16.msra.mxu0 %v3251_v8  ;;  %v3263_v15 = vld [vmem:[%s4717_s1 + $0x5c] ss:$20 sps:$4 sm:$0xff]   ;;  %v3265_v18 = vld [vmem:[%s4717_s1 + $0xa4] ss:$20 sps:$4 sm:$0xff]   ;;  %v3271_v22 = vld [vmem:[%s4717_s1 + $0xcc] ss:$20 sps:$4 sm:$0xff]  }
   0x8   :  { %1820 = vmatpush1.bf16.msra.mxu1 %v3248_v6  ;;  %1659 = vmatprep.subr.bf16.mxu0 %v3253_v10  ;;  %v3269_v19 = vld [vmem:[%s4717_s1 + $0x84] ss:$20 sps:$4 sm:$0xff]   ;;  %v3275_v23 = vld [vmem:[%s4717_s1 + $0xac] ss:$20 sps:$4 sm:$0xff]   ;;  %v3273_v24 = vld [vmem:[%s4717_s1 + $0xa8] ss:$20 sps:$4 sm:$0xff]  }
   0x9   :  { %1821 = vmatprep.subr.bf16.mxu1 %v3257_v12  ;;  %v3276_v25 = vld [vmem:[%s4717_s1 + $0xc8] ss:$20 sps:$4 sm:$0xff]   ;;  %v3279_v28 = vld [vmem:[%s4717_s1 + $0xd0] ss:$20 sps:$4 sm:$0xff]   ;;  %v3285_v32 = vld [vmem:[%s4717_s1 + $0xf8] ss:$20 sps:$4 sm:$0xff]  }
   0xa   :  { %v3277_v26 = vld [vmem:[%s4717_s1 + $0xf4] ss:$20 sps:$4 sm:$0xff]   ;;  %v3282_v29 = vld [vmem:[%s4717_s1 + $0xf0] ss:$20 sps:$4 sm:$0xff]   ;;  %v3288_v33 = vld [vmem:[%s4717_s1 + $0x118] ss:$20 sps:$4 sm:$0xff]  }
   0xb   :  { %1660 = vmatpush1.bf16.msra.mxu0 %v3258_v13  ;;  %v3281_v27 = vld [vmem:[%s4717_s1 + $0xd4] ss:$20 sps:$4 sm:$0xff]   ;;  %v3283_v30 = vld [vmem:[%s4717_s1 + $0x11c] ss:$20 sps:$4 sm:$0xff]   ;;  %v3289_v34 = vld [vmem:[%s4717_s1 + $0x144] ss:$20 sps:$4 sm:$0xff]  }
   0xc   :  { %1822 = vmatpush1.bf16.msra.mxu1 %v3255_v11  ;;  %1661 = vmatprep.subr.bf16.mxu0 %v3259_v14  ;;  %v3287_v31 = vld [vmem:[%s4717_s1 + $0xfc] ss:$20 sps:$4 sm:$0xff]   ;;  %v3293_v35 = vld [vmem:[%s4717_s1 + $0x124] ss:$20 sps:$4 sm:$0xff]   ;;  %v3291_v36 = vld [vmem:[%s4717_s1 + $0x120] ss:$20 sps:$4 sm:$0xff]  }
   0xd   :  { %1823 = vmatprep.subr.bf16.mxu1 %v3263_v15  ;;  %v3294_v37 = vld [vmem:[%s4717_s1 + $0x140] ss:$20 sps:$4 sm:$0xff]   ;;  %v3297_v40 = vld [vmem:[%s4717_s1 + $0x148] ss:$20 sps:$4 sm:$0xff]   ;;  %v3303_v44 = vld [vmem:[%s4717_s1 + $0x170] ss:$20 sps:$4 sm:$0xff]  }
   0xe   :  { %v3295_v38 = vld [vmem:[%s4717_s1 + $0x16c] ss:$20 sps:$4 sm:$0xff]   ;;  %v3300_v41 = vld [vmem:[%s4717_s1 + $0x168] ss:$20 sps:$4 sm:$0xff]   ;;  %v3306_v45 = vld [vmem:[%s4717_s1 + $0x190] ss:$20 sps:$4 sm:$0xff]  }
   0xf   :  { %1662 = vmatpush1.bf16.msra.mxu0 %v3264_v17  ;;  %v3299_v39 = vld [vmem:[%s4717_s1 + $0x14c] ss:$20 sps:$4 sm:$0xff]   ;;  %v3301_v42 = vld [vmem:[%s4717_s1 + $0x194] ss:$20 sps:$4 sm:$0xff]   ;;  %v3307_v46 = vld [vmem:[%s4717_s1 + $0x1bc] ss:$20 sps:$4 sm:$0xff]  }
  0x10   :  { %1824 = vmatpush1.bf16.msra.mxu1 %v3261_v16  ;;  %1663 = vmatprep.subr.bf16.mxu0 %v3265_v18  ;;  %v3305_v43 = vld [vmem:[%s4717_s1 + $0x174] ss:$20 sps:$4 sm:$0xff]   ;;  %v3311_v47 = vld [vmem:[%s4717_s1 + $0x19c] ss:$20 sps:$4 sm:$0xff]   ;;  %v3309_v48 = vld [vmem:[%s4717_s1 + $0x198] ss:$20 sps:$4 sm:$0xff]  }
  0x11   :  { %1825 = vmatprep.subr.bf16.mxu1 %v3269_v19  ;;  %v28_v49 = vld [vmem:[%s4716_s0] sm:$0xff]  ;;  %v3312_v50 = vld [vmem:[%s4717_s1 + $0x1b8] ss:$20 sps:$4 sm:$0xff]   ;;  %v3321_v58 = vld [vmem:[%s4717_s1 + $0x1e8] ss:$20 sps:$4 sm:$0xff]  }
  0x12   :  { %v3313_v51 = vld [vmem:[%s4717_s1 + $0x1e4] ss:$20 sps:$4 sm:$0xff]   ;;  %v3862_v52 = vcombine.high %v28_v49, %v28_v49  ;;  %v3315_v54 = vld [vmem:[%s4717_s1 + $0x1c0] ss:$20 sps:$4 sm:$0xff]   ;;  %v3324_v59 = vld [vmem:[%s4717_s1 + $0x208] ss:$20 sps:$4 sm:$0xff]   ;;  %v3920_v8 = vcombine.low %v28_v49, %v28_v49 }
  0x13   :  { %1664 = vmatpush1.bf16.msra.mxu0 %v3270_v21  ;;  %v3317_v53 = vld [vmem:[%s4717_s1 + $0x1c4] ss:$20 sps:$4 sm:$0xff]   ;;  %v3318_v55 = vld [vmem:[%s4717_s1 + $0x1e0] ss:$20 sps:$4 sm:$0xff]   ;;  %v3331_v0 = vld [vmem:[%s4717_s1 + $0x25c] ss:$20 sps:$4 sm:$0xff]  }
  0x14   :  { %1826 = vmatpush1.bf16.msra.mxu1 %v3267_v20  ;;  %1665 = vmatprep.subr.bf16.mxu0 %v3271_v22  ;;  %v3319_v56 = vld [vmem:[%s4717_s1 + $0x20c] ss:$20 sps:$4 sm:$0xff]   ;;  %v3325_v60 = vld [vmem:[%s4717_s1 + $0x234] ss:$20 sps:$4 sm:$0xff]   ;;  %v3327_v62 = vld [vmem:[%s4717_s1 + $0x210] ss:$20 sps:$4 sm:$0xff]  }
  0x15   :  { %1827 = vmatprep.subr.bf16.mxu1 %v3275_v23  ;;  %1687 = vmatprep.mubr.bf16.mxu0 %v3862_v52  ;;  %v3323_v57 = vld [vmem:[%s4717_s1 + $0x1ec] ss:$20 sps:$4 sm:$0xff]   ;;  %v3329_v61 = vld [vmem:[%s4717_s1 + $0x214] ss:$20 sps:$4 sm:$0xff]   ;;  %v3330_v63 = vld [vmem:[%s4717_s1 + $0x230] ss:$20 sps:$4 sm:$0xff]  }
  0x16   :  { %1851 = vmatprep.mubr.bf16.mxu1 %v3862_v52  ;;  %v3335_v1 = vld [vmem:[%s4717_s1 + $0x23c] ss:$20 sps:$4 sm:$0xff]   ;;  %v3333_v3 = vld [vmem:[%s4717_s1 + $0x238] ss:$20 sps:$4 sm:$0xff]   ;;  %v3338_v7 = vld [vmem:[%s4717_s1 + $0x280] ss:$20 sps:$4 sm:$0xff]  }
  0x17   :  { %1666 = vmatpush1.bf16.msra.mxu0 %v3276_v25  ;;  %v3336_v4 = vld [vmem:[%s4717_s1 + $0x258] ss:$20 sps:$4 sm:$0xff]   ;;  %v3341_v9 = vld [vmem:[%s4717_s1 + $0x260] ss:$20 sps:$4 sm:$0xff]   ;;  %v3345_v12 = vld [vmem:[%s4717_s1 + $0x2a8] ss:$20 sps:$4 sm:$0xff]  }
  0x18   :  { %1828 = vmatpush1.bf16.msra.mxu1 %v3273_v24  ;;  %1667 = vmatprep.subr.bf16.mxu0 %v3277_v26  ;;  %v3340_v5 = vld [vmem:[%s4717_s1 + $0x284] ss:$20 sps:$4 sm:$0xff]   ;;  %v3347_v10 = vld [vmem:[%s4717_s1 + $0x2ac] ss:$20 sps:$4 sm:$0xff]   ;;  %v3348_v13 = vld [vmem:[%s4717_s1 + $0x288] ss:$20 sps:$4 sm:$0xff]  }
  0x19   :  { %1829 = vmatprep.subr.bf16.mxu1 %v3281_v27  ;;  %v3343_v6 = vld [vmem:[%s4717_s1 + $0x264] ss:$20 sps:$4 sm:$0xff]   ;;  %v3350_v11 = vld [vmem:[%s4717_s1 + $0x28c] ss:$20 sps:$4 sm:$0xff]   ;;  %v3353_v14 = vld [vmem:[%s4717_s1 + $0x2d4] ss:$20 sps:$4 sm:$0xff]  }
  0x1a   :  { %v3356_v15 = vld [vmem:[%s4717_s1 + $0x2b4] ss:$20 sps:$4 sm:$0xff]   ;;  %v3351_v16 = vld [vmem:[%s4717_s1 + $0x2d0] ss:$20 sps:$4 sm:$0xff]   ;;  %v3357_v20 = vld [vmem:[%s4717_s1 + $0x2f8] ss:$20 sps:$4 sm:$0xff]  }
  0x1b   :  { %1668 = vmatpush1.bf16.msra.mxu0 %v3282_v29  ;;  %v3354_v17 = vld [vmem:[%s4717_s1 + $0x2b0] ss:$20 sps:$4 sm:$0xff]   ;;  %v3360_v21 = vld [vmem:[%s4717_s1 + $0x2d8] ss:$20 sps:$4 sm:$0xff]   ;;  %v3363_v24 = vld [vmem:[%s4717_s1 + $0x320] ss:$20 sps:$4 sm:$0xff]  }
  0x1c   :  { %1830 = vmatpush1.bf16.msra.mxu1 %v3279_v28  ;;  %1669 = vmatprep.subr.bf16.mxu0 %v3283_v30  ;;  %v3359_v18 = vld [vmem:[%s4717_s1 + $0x2fc] ss:$20 sps:$4 sm:$0xff]   ;;  %v3365_v22 = vld [vmem:[%s4717_s1 + $0x324] ss:$20 sps:$4 sm:$0xff]   ;;  %v3366_v25 = vld [vmem:[%s4717_s1 + $0x300] ss:$20 sps:$4 sm:$0xff]  }
  0x1d   :  { %1831 = vmatprep.subr.bf16.mxu1 %v3287_v31  ;;  %v3362_v19 = vld [vmem:[%s4717_s1 + $0x2dc] ss:$20 sps:$4 sm:$0xff]   ;;  %v3368_v23 = vld [vmem:[%s4717_s1 + $0x304] ss:$20 sps:$4 sm:$0xff]   ;;  %v3371_v26 = vld [vmem:[%s4717_s1 + $0x34c] ss:$20 sps:$4 sm:$0xff]  }
  0x1e   :  { %v3374_v27 = vld [vmem:[%s4717_s1 + $0x32c] ss:$20 sps:$4 sm:$0xff]   ;;  %v3369_v28 = vld [vmem:[%s4717_s1 + $0x348] ss:$20 sps:$4 sm:$0xff]  }
  0x1f   :  { %1670 = vmatpush1.bf16.msra.mxu0 %v3288_v33  ;;  %v3372_v29 = vld [vmem:[%s4717_s1 + $0x328] ss:$20 sps:$4 sm:$0xff]   ;;  %v3375_v33 = vld [vmem:[%s4717_s1 + $0x370] ss:$20 sps:$4 sm:$0xff]  }
  0x20   :  { %1832 = vmatpush1.bf16.msra.mxu1 %v3285_v32  ;;  %1671 = vmatprep.subr.bf16.mxu0 %v3289_v34  ;;  %v3377_v30 = vld [vmem:[%s4717_s1 + $0x374] ss:$20 sps:$4 sm:$0xff]   ;;  %v3378_v34 = vld [vmem:[%s4717_s1 + $0x350] ss:$20 sps:$4 sm:$0xff]  }
  0x21   :  { %1833 = vmatprep.subr.bf16.mxu1 %v3293_v35  ;;  %v3380_v31 = vld [vmem:[%s4717_s1 + $0x354] ss:$20 sps:$4 sm:$0xff]  }
  0x22   :  { %v3996_v32 = vld [vmem:[%s4716_s0 + $0x8] sm:$0xff] }
  0x23   :  { %1672 = vmatpush1.bf16.msra.mxu0 %v3294_v37  ;;  %v4006_v35 = vcombine.high %v3996_v32, %v3996_v32  ;;  %v3386_v37 = vld [vmem:[%s4717_s1 + $0x37c] ss:$20 sps:$4 sm:$0xff]   ;;  %v3404_v49 = vld [vmem:[%s4717_s1 + $0x3f4] ss:$20 sps:$4 sm:$0xff]  }
  0x24   :  { %1834 = vmatpush1.bf16.msra.mxu1 %v3291_v36  ;;  %1673 = vmatprep.subr.bf16.mxu0 %v3295_v38  ;;  %v3383_v36 = vld [vmem:[%s4717_s1 + $0x39c] ss:$20 sps:$4 sm:$0xff]   ;;  %v3381_v38 = vld [vmem:[%s4717_s1 + $0x398] ss:$20 sps:$4 sm:$0xff]  }
  0x25   :  { %1835 = vmatprep.subr.bf16.mxu1 %v3299_v39  ;;  %v3384_v39 = vld [vmem:[%s4717_s1 + $0x378] ss:$20 sps:$4 sm:$0xff]  }
  0x27   :  { %1674 = vmatpush1.bf16.msra.mxu0 %v3300_v41  ;;  %v3392_v41 = vld [vmem:[%s4717_s1 + $0x3a4] ss:$20 sps:$4 sm:$0xff]  }
  0x28   :  { %1836 = vmatpush1.bf16.msra.mxu1 %v3297_v40  ;;  %1675 = vmatprep.subr.bf16.mxu0 %v3301_v42  ;;  %v3389_v40 = vld [vmem:[%s4717_s1 + $0x3c4] ss:$20 sps:$4 sm:$0xff]   ;;  %v3387_v42 = vld [vmem:[%s4717_s1 + $0x3c0] ss:$20 sps:$4 sm:$0xff]  }
  0x29   :  { %1837 = vmatprep.subr.bf16.mxu1 %v3305_v43  ;;  %v3390_v43 = vld [vmem:[%s4717_s1 + $0x3a0] ss:$20 sps:$4 sm:$0xff]  }
  0x2b   :  { %1676 = vmatpush1.bf16.msra.mxu0 %v3306_v45  ;;  %v3398_v45 = vld [vmem:[%s4717_s1 + $0x3cc] ss:$20 sps:$4 sm:$0xff]  }
  0x2c   :  { %1838 = vmatpush1.bf16.msra.mxu1 %v3303_v44  ;;  %1677 = vmatprep.subr.bf16.mxu0 %v3307_v46  ;;  %v3395_v44 = vld [vmem:[%s4717_s1 + $0x3ec] ss:$20 sps:$4 sm:$0xff]   ;;  %v3393_v46 = vld [vmem:[%s4717_s1 + $0x3e8] ss:$20 sps:$4 sm:$0xff]  }
  0x2d   :  { %1839 = vmatprep.subr.bf16.mxu1 %v3311_v47  ;;  %v3396_v47 = vld [vmem:[%s4717_s1 + $0x3c8] ss:$20 sps:$4 sm:$0xff]  }
  0x2f   :  { %1678 = vmatpush1.bf16.msra.mxu0 %v3312_v50  ;;  %v3399_v50 = vld [vmem:[%s4717_s1 + $0x410] ss:$20 sps:$4 sm:$0xff]  }
  0x30   :  { %1840 = vmatpush1.bf16.msra.mxu1 %v3309_v48  ;;  %1679 = vmatprep.subr.bf16.mxu0 %v3313_v51  ;;  %v3401_v48 = vld [vmem:[%s4717_s1 + $0x414] ss:$20 sps:$4 sm:$0xff]   ;;  %v3402_v51 = vld [vmem:[%s4717_s1 + $0x3f0] ss:$20 sps:$4 sm:$0xff]  }
  0x31   :  { %1841 = vmatprep.subr.bf16.mxu1 %v3317_v53  ;;  %v3407_v53 = vld [vmem:[%s4717_s1 + $0x43c] ss:$20 sps:$4 sm:$0xff]  }
  0x33   :  { %1680 = vmatpush1.bf16.msra.mxu0 %v3318_v55  ;;  %v3405_v55 = vld [vmem:[%s4717_s1 + $0x438] ss:$20 sps:$4 sm:$0xff]  }
  0x34   :  { %1842 = vmatpush1.bf16.msra.mxu1 %v3315_v54  ;;  %1681 = vmatprep.subr.bf16.mxu0 %v3319_v56  ;;  %v3410_v54 = vld [vmem:[%s4717_s1 + $0x41c] ss:$20 sps:$4 sm:$0xff]   ;;  %v3408_v56 = vld [vmem:[%s4717_s1 + $0x418] ss:$20 sps:$4 sm:$0xff]  }
  0x35   :  { %1843 = vmatprep.subr.bf16.mxu1 %v3323_v57  ;;  %v3413_v57 = vld [vmem:[%s4717_s1 + $0x464] ss:$20 sps:$4 sm:$0xff]  }
  0x37   :  { %1682 = vmatpush1.bf16.msra.mxu0 %v3324_v59  ;;  %v3411_v59 = vld [vmem:[%s4717_s1 + $0x460] ss:$20 sps:$4 sm:$0xff]  }
  0x38   :  { %1844 = vmatpush1.bf16.msra.mxu1 %v3321_v58  ;;  %1683 = vmatprep.subr.bf16.mxu0 %v3325_v60  ;;  %v3416_v58 = vld [vmem:[%s4717_s1 + $0x444] ss:$20 sps:$4 sm:$0xff]   ;;  %v3414_v60 = vld [vmem:[%s4717_s1 + $0x440] ss:$20 sps:$4 sm:$0xff]  }
  0x39   :  { %1845 = vmatprep.subr.bf16.mxu1 %v3329_v61  ;;  %v3419_v61 = vld [vmem:[%s4717_s1 + $0x48c] ss:$20 sps:$4 sm:$0xff]  }
  0x3b   :  { %1684 = vmatpush1.bf16.msra.mxu0 %v3330_v63  ;;  %v3417_v63 = vld [vmem:[%s4717_s1 + $0x488] ss:$20 sps:$4 sm:$0xff]  }
  0x3c   :  { %1846 = vmatpush1.bf16.msra.mxu1 %v3327_v62  ;;  %1685 = vmatprep.subr.bf16.mxu0 %v3331_v0  ;;  %v3422_v62 = vld [vmem:[%s4717_s1 + $0x46c] ss:$20 sps:$4 sm:$0xff]   ;;  %v3420_v0 = vld [vmem:[%s4717_s1 + $0x468] ss:$20 sps:$4 sm:$0xff]  }
  0x3d   :  { %1847 = vmatprep.subr.bf16.mxu1 %v3335_v1  ;;  %v3425_v1 = vld [vmem:[%s4717_s1 + $0x4b4] ss:$20 sps:$4 sm:$0xff]  }
  0x3f   :  { %1686 = vmatpush1.bf16.msra.mxu0 %v3336_v4  ;;  %v3423_v4 = vld [vmem:[%s4717_s1 + $0x4b0] ss:$20 sps:$4 sm:$0xff]  }
  0x40   :  { %1848 = vmatpush1.bf16.msra.mxu1 %v3333_v3  ;;  %1696 = vmatprep.subr.bf16.mxu0 %v3340_v5  ;;  %v3428_v3 = vld [vmem:[%s4717_s1 + $0x494] ss:$20 sps:$4 sm:$0xff]   ;;  %v3426_v5 = vld [vmem:[%s4717_s1 + $0x490] ss:$20 sps:$4 sm:$0xff]  }
  0x41   :  { %1849 = vmatprep.subr.bf16.mxu1 %v3343_v6  ;;  %v3431_v6 = vld [vmem:[%s4717_s1 + $0x4dc] ss:$20 sps:$4 sm:$0xff]  }
  0x42   :  { %1688 = vmatmul.mubr.bf16.vlgmr.msra.gmra.mrb[0].mxu0 %v3920_v8 }
  0x43   :  { %1697 = vmatpush1.bf16.msra.mxu0 %v3338_v7  ;;  %1728 = vmatprep.mubr.bf16.mxu0 %v4006_v35  ;;  %v3434_v7 = vld [vmem:[%s4717_s1 + $0x4bc] ss:$20 sps:$4 sm:$0xff]  }
  0x44   :  { %1850 = vmatpush1.bf16.msra.mxu1 %v3341_v9  ;;  %1698 = vmatprep.subr.bf16.mxu0 %v3347_v10  ;;  %v3429_v9 = vld [vmem:[%s4717_s1 + $0x4d8] ss:$20 sps:$4 sm:$0xff]  }
  0x45   :  { %1860 = vmatprep.subr.bf16.mxu1 %v3350_v11  ;;  %v3432_v10 = vld [vmem:[%s4717_s1 + $0x4b8] ss:$20 sps:$4 sm:$0xff]  }
  0x46   :  { %v3439_v11 = vld [vmem:[%s4717_s1 + $0x504] ss:$20 sps:$4 sm:$0xff]  }
  0x47   :  { %1852 = vmatmul.mubr.bf16.vlgmr.msra.gmra.mrb[4].mxu1 %v3920_v8  ;;  %1699 = vmatpush1.bf16.msra.mxu0 %v3345_v12  ;;  %v3442_v12 = vld [vmem:[%s4717_s1 + $0x4e4] ss:$20 sps:$4 sm:$0xff]  }
  0x48   :  { %1861 = vmatpush1.bf16.msra.mxu1 %v3348_v13  ;;  %1700 = vmatprep.subr.bf16.mxu0 %v3353_v14  ;;  %v4126_v13 = vcombine.low %v3996_v32, %v3996_v32  ;;  %v3437_v14 = vld [vmem:[%s4717_s1 + $0x500] ss:$20 sps:$4 sm:$0xff]  }
  0x49   :  { %1862 = vmatprep.subr.bf16.mxu1 %v3356_v15  ;;  %1892 = vmatprep.mubr.bf16.mxu1 %v4006_v35  ;;  %v3440_v15 = vld [vmem:[%s4717_s1 + $0x4e0] ss:$20 sps:$4 sm:$0xff]  }
  0x4a   :  { %v3461_v32 = vld [vmem:[%s4717_s1 + $0x5a0] ss:$20 sps:$4 sm:$0xff]  }
  0x4b   :  { %1701 = vmatpush1.bf16.msra.mxu0 %v3351_v16  ;;  %v3445_v16 = vld [vmem:[%s4717_s1 + $0x52c] ss:$20 sps:$4 sm:$0xff]  }
  0x4c   :  { %1863 = vmatpush1.bf16.msra.mxu1 %v3354_v17  ;;  %1702 = vmatprep.subr.bf16.mxu0 %v3359_v18  ;;  %v3448_v17 = vld [vmem:[%s4717_s1 + $0x50c] ss:$20 sps:$4 sm:$0xff]   ;;  %v4143_v18 = vld [vmem:[%s4716_s0 + $0x10] sm:$0xff] }
  0x4d   :  { %1864 = vmatprep.subr.bf16.mxu1 %v3362_v19  ;;  %v3443_v19 = vld [vmem:[%s4717_s1 + $0x528] ss:$20 sps:$4 sm:$0xff]  }
  0x4f   :  { %1703 = vmatpush1.bf16.msra.mxu0 %v3357_v20  ;;  %v4150_v20 = vcombine.high %v4143_v18, %v4143_v18 }
  0x50   :  { %1865 = vmatpush1.bf16.msra.mxu1 %v3360_v21  ;;  %1704 = vmatprep.subr.bf16.mxu0 %v3365_v22  ;;  %v3446_v21 = vld [vmem:[%s4717_s1 + $0x508] ss:$20 sps:$4 sm:$0xff]  }
  0x51   :  { %1866 = vmatprep.subr.bf16.mxu1 %v3368_v23  ;;  %v3451_v22 = vld [vmem:[%s4717_s1 + $0x554] ss:$20 sps:$4 sm:$0xff]  }
  0x52   :  { %v3454_v23 = vld [vmem:[%s4717_s1 + $0x534] ss:$20 sps:$4 sm:$0xff]  }
  0x53   :  { %1705 = vmatpush1.bf16.msra.mxu0 %v3363_v24  ;;  %v3449_v24 = vld [vmem:[%s4717_s1 + $0x550] ss:$20 sps:$4 sm:$0xff]  }
  0x54   :  { %1867 = vmatpush1.bf16.msra.mxu1 %v3366_v25  ;;  %1706 = vmatprep.subr.bf16.mxu0 %v3371_v26  ;;  %v3452_v25 = vld [vmem:[%s4717_s1 + $0x530] ss:$20 sps:$4 sm:$0xff]  }
  0x55   :  { %1868 = vmatprep.subr.bf16.mxu1 %v3374_v27  ;;  %v3457_v26 = vld [vmem:[%s4717_s1 + $0x57c] ss:$20 sps:$4 sm:$0xff]  }
  0x56   :  { %v3460_v27 = vld [vmem:[%s4717_s1 + $0x55c] ss:$20 sps:$4 sm:$0xff]  }
  0x57   :  { %1707 = vmatpush1.bf16.msra.mxu0 %v3369_v28  ;;  %v3455_v28 = vld [vmem:[%s4717_s1 + $0x578] ss:$20 sps:$4 sm:$0xff]  }
  0x58   :  { %1869 = vmatpush1.bf16.msra.mxu1 %v3372_v29  ;;  %1708 = vmatprep.subr.bf16.mxu0 %v3377_v30  ;;  %v3458_v29 = vld [vmem:[%s4717_s1 + $0x558] ss:$20 sps:$4 sm:$0xff]  }
  0x59   :  { %1870 = vmatprep.subr.bf16.mxu1 %v3380_v31  ;;  %v3463_v30 = vld [vmem:[%s4717_s1 + $0x5a4] ss:$20 sps:$4 sm:$0xff]  }
  0x5a   :  { %v3466_v31 = vld [vmem:[%s4717_s1 + $0x584] ss:$20 sps:$4 sm:$0xff]  }
  0x5b   :  { %1709 = vmatpush1.bf16.msra.mxu0 %v3375_v33  ;;  %v3464_v33 = vld [vmem:[%s4717_s1 + $0x580] ss:$20 sps:$4 sm:$0xff]  }
  0x5c   :  { %1871 = vmatpush1.bf16.msra.mxu1 %v3378_v34  ;;  %1710 = vmatprep.subr.bf16.mxu0 %v3383_v36  ;;  %v3469_v34 = vld [vmem:[%s4717_s1 + $0x5cc] ss:$20 sps:$4 sm:$0xff]  }
  0x5d   :  { %1872 = vmatprep.subr.bf16.mxu1 %v3386_v37  ;;  %v3472_v36 = vld [vmem:[%s4717_s1 + $0x5ac] ss:$20 sps:$4 sm:$0xff]   ;;  %v3467_v37 = vld [vmem:[%s4717_s1 + $0x5c8] ss:$20 sps:$4 sm:$0xff]  }
  0x5f   :  { %1711 = vmatpush1.bf16.msra.mxu0 %v3381_v38  ;;  %v3470_v38 = vld [vmem:[%s4717_s1 + $0x5a8] ss:$20 sps:$4 sm:$0xff]  }
  0x60   :  { %1873 = vmatpush1.bf16.msra.mxu1 %v3384_v39  ;;  %1712 = vmatprep.subr.bf16.mxu0 %v3389_v40  ;;  %v3475_v39 = vld [vmem:[%s4717_s1 + $0x5f4] ss:$20 sps:$4 sm:$0xff]  }
  0x61   :  { %1874 = vmatprep.subr.bf16.mxu1 %v3392_v41  ;;  %v3478_v40 = vld [vmem:[%s4717_s1 + $0x5d4] ss:$20 sps:$4 sm:$0xff]   ;;  %v3473_v41 = vld [vmem:[%s4717_s1 + $0x5f0] ss:$20 sps:$4 sm:$0xff]  }
  0x63   :  { %1713 = vmatpush1.bf16.msra.mxu0 %v3387_v42  ;;  %v3476_v42 = vld [vmem:[%s4717_s1 + $0x5d0] ss:$20 sps:$4 sm:$0xff]  }
  0x64   :  { %1875 = vmatpush1.bf16.msra.mxu1 %v3390_v43  ;;  %1714 = vmatprep.subr.bf16.mxu0 %v3395_v44  ;;  %v3481_v43 = vld [vmem:[%s4717_s1 + $0x61c] ss:$20 sps:$4 sm:$0xff]  }
  0x65   :  { %1876 = vmatprep.subr.bf16.mxu1 %v3398_v45  ;;  %v3484_v44 = vld [vmem:[%s4717_s1 + $0x5fc] ss:$20 sps:$4 sm:$0xff]   ;;  %v3479_v45 = vld [vmem:[%s4717_s1 + $0x618] ss:$20 sps:$4 sm:$0xff]  }
  0x67   :  { %1715 = vmatpush1.bf16.msra.mxu0 %v3393_v46  ;;  %v3482_v46 = vld [vmem:[%s4717_s1 + $0x5f8] ss:$20 sps:$4 sm:$0xff]  }
  0x68   :  { %1877 = vmatpush1.bf16.msra.mxu1 %v3396_v47  ;;  %1716 = vmatprep.subr.bf16.mxu0 %v3401_v48  ;;  %v3487_v47 = vld [vmem:[%s4717_s1 + $0x644] ss:$20 sps:$4 sm:$0xff]  }
  0x69   :  { %1878 = vmatprep.subr.bf16.mxu1 %v3404_v49  ;;  %v3490_v48 = vld [vmem:[%s4717_s1 + $0x624] ss:$20 sps:$4 sm:$0xff]   ;;  %v3485_v49 = vld [vmem:[%s4717_s1 + $0x640] ss:$20 sps:$4 sm:$0xff]  }
  0x6b   :  { %1717 = vmatpush1.bf16.msra.mxu0 %v3399_v50  ;;  %v3488_v50 = vld [vmem:[%s4717_s1 + $0x620] ss:$20 sps:$4 sm:$0xff]  }
  0x6c   :  { %1879 = vmatpush1.bf16.msra.mxu1 %v3402_v51  ;;  %1718 = vmatprep.subr.bf16.mxu0 %v3407_v53  ;;  %v3493_v51 = vld [vmem:[%s4717_s1 + $0x66c] ss:$20 sps:$4 sm:$0xff]  }
  0x6d   :  { %1880 = vmatprep.subr.bf16.mxu1 %v3410_v54  ;;  %v3496_v53 = vld [vmem:[%s4717_s1 + $0x64c] ss:$20 sps:$4 sm:$0xff]   ;;  %v3491_v54 = vld [vmem:[%s4717_s1 + $0x668] ss:$20 sps:$4 sm:$0xff]  }
  0x6f   :  { %1719 = vmatpush1.bf16.msra.mxu0 %v3405_v55  ;;  %v3494_v55 = vld [vmem:[%s4717_s1 + $0x648] ss:$20 sps:$4 sm:$0xff]  }
  0x70   :  { %1881 = vmatpush1.bf16.msra.mxu1 %v3408_v56  ;;  %1720 = vmatprep.subr.bf16.mxu0 %v3413_v57  ;;  %v3499_v56 = vld [vmem:[%s4717_s1 + $0x694] ss:$20 sps:$4 sm:$0xff]  }
  0x71   :  { %1882 = vmatprep.subr.bf16.mxu1 %v3416_v58  ;;  %v3502_v57 = vld [vmem:[%s4717_s1 + $0x674] ss:$20 sps:$4 sm:$0xff]   ;;  %v3497_v58 = vld [vmem:[%s4717_s1 + $0x690] ss:$20 sps:$4 sm:$0xff]  }
  0x73   :  { %1721 = vmatpush1.bf16.msra.mxu0 %v3411_v59  ;;  %v3500_v59 = vld [vmem:[%s4717_s1 + $0x670] ss:$20 sps:$4 sm:$0xff]  }
  0x74   :  { %1883 = vmatpush1.bf16.msra.mxu1 %v3414_v60  ;;  %1722 = vmatprep.subr.bf16.mxu0 %v3419_v61  ;;  %v3505_v60 = vld [vmem:[%s4717_s1 + $0x6bc] ss:$20 sps:$4 sm:$0xff]  }
  0x75   :  { %1884 = vmatprep.subr.bf16.mxu1 %v3422_v62  ;;  %v3508_v61 = vld [vmem:[%s4717_s1 + $0x69c] ss:$20 sps:$4 sm:$0xff]   ;;  %v3503_v62 = vld [vmem:[%s4717_s1 + $0x6b8] ss:$20 sps:$4 sm:$0xff]  }
  0x77   :  { %1723 = vmatpush1.bf16.msra.mxu0 %v3417_v63  ;;  %v3506_v63 = vld [vmem:[%s4717_s1 + $0x698] ss:$20 sps:$4 sm:$0xff]  }
  0x78   :  { %1885 = vmatpush1.bf16.msra.mxu1 %v3420_v0  ;;  %1724 = vmatprep.subr.bf16.mxu0 %v3425_v1  ;;  %v3511_v0 = vld [vmem:[%s4717_s1 + $0x6e4] ss:$20 sps:$4 sm:$0xff]  }
  0x79   :  { %1886 = vmatprep.subr.bf16.mxu1 %v3428_v3  ;;  %v3514_v1 = vld [vmem:[%s4717_s1 + $0x6c4] ss:$20 sps:$4 sm:$0xff]   ;;  %v3509_v3 = vld [vmem:[%s4717_s1 + $0x6e0] ss:$20 sps:$4 sm:$0xff]  }
  0x7b   :  { %1725 = vmatpush1.bf16.msra.mxu0 %v3423_v4  ;;  %v3512_v4 = vld [vmem:[%s4717_s1 + $0x6c0] ss:$20 sps:$4 sm:$0xff]  }
  0x7c   :  { %1887 = vmatpush1.bf16.msra.mxu1 %v3426_v5  ;;  %1726 = vmatprep.subr.bf16.mxu0 %v3431_v6  ;;  %v3517_v5 = vld [vmem:[%s4717_s1 + $0x70c] ss:$20 sps:$4 sm:$0xff]  }
  0x7d   :  { %1888 = vmatprep.subr.bf16.mxu1 %v3434_v7  ;;  %v3520_v6 = vld [vmem:[%s4717_s1 + $0x6ec] ss:$20 sps:$4 sm:$0xff]   ;;  %v3515_v7 = vld [vmem:[%s4717_s1 + $0x708] ss:$20 sps:$4 sm:$0xff]  }
  0x7f   :  { %1727 = vmatpush1.bf16.msra.mxu0 %v3429_v9  ;;  %v3518_v9 = vld [vmem:[%s4717_s1 + $0x6e8] ss:$20 sps:$4 sm:$0xff]  }
  0x80   :  { %1889 = vmatpush1.bf16.msra.mxu1 %v3432_v10  ;;  %1737 = vmatprep.subr.bf16.mxu0 %v3439_v11  ;;  %v3523_v10 = vld [vmem:[%s4717_s1 + $0x734] ss:$20 sps:$4 sm:$0xff]  }
  0x81   :  { %1890 = vmatprep.subr.bf16.mxu1 %v3442_v12  ;;  %v3526_v11 = vld [vmem:[%s4717_s1 + $0x714] ss:$20 sps:$4 sm:$0xff]   ;;  %v3521_v12 = vld [vmem:[%s4717_s1 + $0x730] ss:$20 sps:$4 sm:$0xff]  }
  0x82   :  { %1729 = vmatmul.mubr.bf16.vlgmr.msra.gmra.mrb[0].mxu0 %v4126_v13 }
  0x83   :  { %1738 = vmatpush1.bf16.msra.mxu0 %v3437_v14  ;;  %1769 = vmatprep.mubr.bf16.mxu0 %v4150_v20  ;;  %v3524_v14 = vld [vmem:[%s4717_s1 + $0x710] ss:$20 sps:$4 sm:$0xff]  }
  0x84   :  { %1891 = vmatpush1.bf16.msra.mxu1 %v3440_v15  ;;  %1739 = vmatprep.subr.bf16.mxu0 %v3445_v16  ;;  %v3529_v15 = vld [vmem:[%s4717_s1 + $0x75c] ss:$20 sps:$4 sm:$0xff]  }
  0x85   :  { %1901 = vmatprep.subr.bf16.mxu1 %v3448_v17  ;;  %v3532_v16 = vld [vmem:[%s4717_s1 + $0x73c] ss:$20 sps:$4 sm:$0xff]   ;;  %v3527_v17 = vld [vmem:[%s4717_s1 + $0x758] ss:$20 sps:$4 sm:$0xff]  }
  0x87   :  { %1893 = vmatmul.mubr.bf16.vlgmr.msra.gmra.mrb[4].mxu1 %v4126_v13  ;;  %1740 = vmatpush1.bf16.msra.mxu0 %v3443_v19  ;;  %v3530_v19 = vld [vmem:[%s4717_s1 + $0x738] ss:$20 sps:$4 sm:$0xff]  }
  0x88   :  { %1902 = vmatpush1.bf16.msra.mxu1 %v3446_v21  ;;  %1741 = vmatprep.subr.bf16.mxu0 %v3451_v22  ;;  %v3537_v21 = vld [vmem:[%s4717_s1 + $0x764] ss:$20 sps:$4 sm:$0xff]  }
  0x89   :  { %1903 = vmatprep.subr.bf16.mxu1 %v3454_v23  ;;  %1933 = vmatprep.mubr.bf16.mxu1 %v4150_v20  ;;  %v3538_v22 = vld [vmem:[%s4717_s1 + $0x150] ss:$20 sps:$4 sm:$0xff]   ;;  %v3535_v23 = vld [vmem:[%s4717_s1 + $0x760] ss:$20 sps:$4 sm:$0xff]  }
  0x8b   :  { %1742 = vmatpush1.bf16.msra.mxu0 %v3449_v24  ;;  %v4338_v24 = vcombine.low %v4143_v18, %v4143_v18  ;;  %v3541_v18 = vld [vmem:[%s4717_s1 + $0x38] ss:$20 sps:$4 sm:$0xff]  }
  0x8c   :  { %1904 = vmatpush1.bf16.msra.mxu1 %v3452_v25  ;;  %1743 = vmatprep.subr.bf16.mxu0 %v3457_v26  ;;  %v3539_v25 = vld [vmem:[%s4717_s1 + $0x10] ss:$20 sps:$4 sm:$0xff]   ;;  %v3540_v26 = vld [vmem:[%s4717_s1 + $0x178] ss:$20 sps:$4 sm:$0xff]  }
  0x8d   :  { %1905 = vmatprep.subr.bf16.mxu1 %v3460_v27  ;;  %v3546_v27 = vld [vmem:[%s4717_s1 + $0x78c] ss:$20 sps:$4 sm:$0xff]  }
  0x8f   :  { %1744 = vmatpush1.bf16.msra.mxu0 %v3455_v28  ;;  %v3542_v28 = vld [vmem:[%s4717_s1 + $0x1a0] ss:$20 sps:$4 sm:$0xff]  }
  0x90   :  { %1906 = vmatpush1.bf16.msra.mxu1 %v3458_v29  ;;  %1745 = vmatprep.subr.bf16.mxu0 %v3463_v30  ;;  %v3544_v29 = vld [vmem:[%s4717_s1 + $0x788] ss:$20 sps:$4 sm:$0xff]   ;;  %v3549_v30 = vld [vmem:[%s4717_s1 + $0x3d0] ss:$20 sps:$4 sm:$0xff]  }
  0x91   :  { %1907 = vmatprep.subr.bf16.mxu1 %v3466_v31  ;;  %v3543_v31 = vld [vmem:[%s4717_s1 + $0x60] ss:$20 sps:$4 sm:$0xff]  }
  0x93   :  { %1746 = vmatpush1.bf16.msra.mxu0 %v3461_v32  ;;  %v3547_v32 = vld [vmem:[%s4717_s1 + $0x1c8] ss:$20 sps:$4 sm:$0xff]  }
  0x94   :  { %1908 = vmatpush1.bf16.msra.mxu1 %v3464_v33  ;;  %1747 = vmatprep.subr.bf16.mxu0 %v3469_v34  ;;  %v3548_v33 = vld [vmem:[%s4717_s1 + $0x88] ss:$20 sps:$4 sm:$0xff]   ;;  %v3551_v34 = vld [vmem:[%s4717_s1 + $0x290] ss:$20 sps:$4 sm:$0xff]  }
  0x95   :  { %1909 = vmatprep.subr.bf16.mxu1 %v3472_v36  ;;  %v3552_v36 = vld [vmem:[%s4717_s1 + $0xb0] ss:$20 sps:$4 sm:$0xff]  }
  0x97   :  { %1748 = vmatpush1.bf16.msra.mxu0 %v3467_v37  ;;  %v3554_v37 = vld [vmem:[%s4717_s1 + $0x218] ss:$20 sps:$4 sm:$0xff]  }
  0x98   :  { %1910 = vmatpush1.bf16.msra.mxu1 %v3470_v38  ;;  %1749 = vmatprep.subr.bf16.mxu0 %v3475_v39  ;;  %v3555_v38 = vld [vmem:[%s4717_s1 + $0x2b8] ss:$20 sps:$4 sm:$0xff]  }
  0x99   :  { %1911 = vmatprep.subr.bf16.mxu1 %v3478_v40  ;;  %v3556_v39 = vld [vmem:[%s4717_s1 + $0xd8] ss:$20 sps:$4 sm:$0xff]  }
  0x9a   :  { %v4398_v40 = vld [vmem:[%s4716_s0 + $0x18] ss:$0 sps:$4 sm:$0xff]  }
  0x9b   :  { %1750 = vmatpush1.bf16.msra.mxu0 %v3473_v41  ;;  %v3557_v41 = vld [vmem:[%s4717_s1 + $0x420] ss:$20 sps:$4 sm:$0xff]  }
  0x9c   :  { %1912 = vmatpush1.bf16.msra.mxu1 %v3476_v42  ;;  %1751 = vmatprep.subr.bf16.mxu0 %v3481_v43  ;;  %v3558_v42 = vld [vmem:[%s4717_s1 + $0x240] ss:$20 sps:$4 sm:$0xff]  }
  0x9d   :  { %1913 = vmatprep.subr.bf16.mxu1 %v3484_v44  ;;  %v3559_v43 = vld [vmem:[%s4717_s1 + $0x2e0] ss:$20 sps:$4 sm:$0xff]  }
  0x9e   :  { %v3560_v44 = vld [vmem:[%s4717_s1 + $0x100] ss:$20 sps:$4 sm:$0xff]  }
  0x9f   :  { %1752 = vmatpush1.bf16.msra.mxu0 %v3479_v45  ;;  %v3561_v45 = vld [vmem:[%s4717_s1 + $0x448] ss:$20 sps:$4 sm:$0xff]  }
  0xa0   :  { %1914 = vmatpush1.bf16.msra.mxu1 %v3482_v46  ;;  %1753 = vmatprep.subr.bf16.mxu0 %v3487_v47  ;;  %v3562_v46 = vld [vmem:[%s4717_s1 + $0x268] ss:$20 sps:$4 sm:$0xff]  }
  0xa1   :  { %1915 = vmatprep.subr.bf16.mxu1 %v3490_v48 }
  0xa3   :  { %1754 = vmatpush1.bf16.msra.mxu0 %v3485_v49 }
  0xa4   :  { %1916 = vmatpush1.bf16.msra.mxu1 %v3488_v50  ;;  %1755 = vmatprep.subr.bf16.mxu0 %v3493_v51 }
  0xa5   :  { %1917 = vmatprep.subr.bf16.mxu1 %v3496_v53 }
  0xa7   :  { %1756 = vmatpush1.bf16.msra.mxu0 %v3491_v54 }
  0xa8   :  { %1918 = vmatpush1.bf16.msra.mxu1 %v3494_v55  ;;  %1757 = vmatprep.subr.bf16.mxu0 %v3499_v56 }
  0xa9   :  { %1919 = vmatprep.subr.bf16.mxu1 %v3502_v57 }
  0xab   :  { %1758 = vmatpush1.bf16.msra.mxu0 %v3497_v58 }
  0xac   :  { %1920 = vmatpush1.bf16.msra.mxu1 %v3500_v59  ;;  %1759 = vmatprep.subr.bf16.mxu0 %v3505_v60 }
  0xad   :  { %1921 = vmatprep.subr.bf16.mxu1 %v3508_v61 }
  0xaf   :  { %1760 = vmatpush1.bf16.msra.mxu0 %v3503_v62 }
  0xb0   :  { %1922 = vmatpush1.bf16.msra.mxu1 %v3506_v63  ;;  %1761 = vmatprep.subr.bf16.mxu0 %v3511_v0 }
  0xb1   :  { %1923 = vmatprep.subr.bf16.mxu1 %v3514_v1 }
  0xb3   :  { %1762 = vmatpush1.bf16.msra.mxu0 %v3509_v3 }
  0xb4   :  { %1924 = vmatpush1.bf16.msra.mxu1 %v3512_v4  ;;  %1763 = vmatprep.subr.bf16.mxu0 %v3517_v5 }
  0xb5   :  { %1925 = vmatprep.subr.bf16.mxu1 %v3520_v6 }
  0xb7   :  { %1764 = vmatpush1.bf16.msra.mxu0 %v3515_v7 }
  0xb8   :  { %1926 = vmatpush1.bf16.msra.mxu1 %v3518_v9  ;;  %1765 = vmatprep.subr.bf16.mxu0 %v3523_v10 }
  0xb9   :  { %1927 = vmatprep.subr.bf16.mxu1 %v3526_v11 }
  0xbb   :  { %1766 = vmatpush1.bf16.msra.mxu0 %v3521_v12 }
  0xbc   :  { %1928 = vmatpush1.bf16.msra.mxu1 %v3524_v14  ;;  %1767 = vmatprep.subr.bf16.mxu0 %v3529_v15 }
  0xbd   :  { %1929 = vmatprep.subr.bf16.mxu1 %v3532_v16 }
  0xbf   :  { %1768 = vmatpush1.bf16.msra.mxu0 %v3527_v17 }
  0xc0   :  { %1930 = vmatpush1.bf16.msra.mxu1 %v3530_v19  ;;  %3034 = vmatprep.subr.bf16.mxu0 %v3538_v22 }
  0xc1   :  { %1931 = vmatprep.subr.bf16.mxu1 %v3537_v21 }
  0xc2   :  { %1770 = vmatmul.mubr.bf16.vlgmr.msra.gmra.mrb[0].mxu0 %v4338_v24 }
  0xc3   :  { %3035 = vmatpush3.bf16.msra.mxu0 %v3539_v25  ;;  %2015 = vmatprep.mubr.bf16.mxu0 %v3862_v52  ;;  %v3550_v52 = vld [vmem:[%s4717_s1 + $0x1f0] ss:$20 sps:$4 sm:$0xff]  }
  0xc4   :  { %1932 = vmatpush1.bf16.msra.mxu1 %v3535_v23  ;;  %3036 = vmatprep.subr.bf16.mxu0 %v3540_v26 }
  0xc5   :  { %1942 = vmatprep.subr.bf16.mxu1 %v3546_v27 }
  0xc7   :  { %1934 = vmatmul.mubr.bf16.vlgmr.msra.gmra.mrb[4].mxu1 %v4338_v24  ;;  %3037 = vmatpush3.bf16.msra.mxu0 %v3541_v18 }
  0xc8   :  { %1943 = vmatpush1.bf16.msra.mxu1 %v3544_v29  ;;  %3038 = vmatprep.subr.bf16.mxu0 %v3542_v28 }
  0xc9   :  { %1974 = vmatprep.mubr.bf16.mxu1 %v3663_v2  ;;  %3056 = vmatprep.subr.bf16.mxu1 %v3549_v30  ;;  %v3553_v2 = vld [vmem:[%s4717_s1 + $0x3f8] ss:$20 sps:$4 sm:$0xff]  }
  0xcb   :  { %3039 = vmatpush3.bf16.msra.mxu0 %v3543_v31 }
  0xcc   :  { %3040 = vmatprep.subr.bf16.mxu0 %v3547_v32 }
  0xcf   :  { %3041 = vmatpush3.bf16.msra.mxu0 %v3548_v33 }
  0xd0   :  { %3042 = vmatprep.subr.bf16.mxu0 %v3550_v52 }
  0xd3   :  { %2982 = vmatmul.mubr.msk.bf16.vlgmr.msra.gmra.mrb[4].mxu1 %vm1651_vm0, %v4398_v40  ;;  %3043 = vmatpush3.bf16.msra.mxu0 %v3552_v36 }
  0xd4   :  { %3057 = vmatpush3.bf16.msra.mxu1 %v3551_v34  ;;  %3044 = vmatprep.subr.bf16.mxu0 %v3554_v37 }
  0xd5   :  { %3058 = vmatprep.subr.bf16.mxu1 %v3553_v2  ;;  %2055 = vmatprep.mubr.bf16.mxu1 %v4006_v35 }
  0xd7   :  { %3045 = vmatpush3.bf16.msra.mxu0 %v3556_v39 }
  0xd8   :  { %3059 = vmatpush3.bf16.msra.mxu1 %v3555_v38  ;;  %3046 = vmatprep.subr.bf16.mxu0 %v3558_v42 }
  0xd9   :  { %3060 = vmatprep.subr.bf16.mxu1 %v3557_v41 }
  0xda   :  { %v4421_v47 = vpop.f32.mrb[0].mxu1 }
  0xdb   :  { %v4423_v48 = vpop.f32.mrb[1].mxu1 }
  0xdc   :  { %12 = vsyncpa [#allocation3], 0  ;;  %3061 = vmatpush3.bf16.msra.mxu1 %v3559_v43  ;;  %3047 = vmatpush3.bf16.msra.mxu0 %v3560_v44  ;;  %v3563_v35 = vld [vmem:[%s4717_s1 + $0x308] ss:$20 sps:$4 sm:$0xff]   ;;  %v1816_v50 = vpop.f32.mrb[2].mxu1  ;;  %v3664_v9 = vmov 0.0  }
  0xdd   :  { %v3564_v49 = vld [vmem:[%s4717_s1 + $0x128] ss:$20 sps:$4 sm:$0xff]   ;;  %3062 = vmatprep.subr.bf16.mxu1 %v3561_v45  ;;  %3048 = vmatprep.subr.bf16.mxu0 %v3562_v46  ;;  %v3565_v51 = vld [vmem:[%s4717_s1 + $0x470] ss:$20 sps:$4 sm:$0xff]   ;;  %v1817_v54 = vpop.f32.mrb[3].mxu1  ;;  %vm3665_vm1 = vmmov 0  }
  0xde   :  { %v3567_v53 = vld [vmem:[%s4717_s1 + $0x650] ss:$20 sps:$4 sm:$0xff]   ;;  %v3569_v57 = vld [vmem:[%s4717_s1 + $0x498] ss:$20 sps:$4 sm:$0xff]   ;;  %v3573_v61 = vld [vmem:[%s4717_s1 + $0x4c0] ss:$20 sps:$4 sm:$0xff]  }
  0xdf   :  { %v3566_v55 = vld [vmem:[%s4717_s1 + $0x330] ss:$20 sps:$4 sm:$0xff]   ;;  %v3571_v58 = vld [vmem:[%s4717_s1 + $0x678] ss:$20 sps:$4 sm:$0xff]   ;;  %v3574_v62 = vld [vmem:[%s4717_s1 + $0x380] ss:$20 sps:$4 sm:$0xff]  }
  0xe0   :  { %3063 = vmatpush3.bf16.msra.mxu1 %v3563_v35  ;;  %3049 = vmatpush3.bf16.msra.mxu0 %v3564_v49  ;;  %v3568_v56 = vld [vmem:[%s4717_s1 + $0x510] ss:$20 sps:$4 sm:$0xff]   ;;  %v3570_v59 = vld [vmem:[%s4717_s1 + $0x358] ss:$20 sps:$4 sm:$0xff]   ;;  %v3576_v63 = vld [vmem:[%s4717_s1 + $0x560] ss:$20 sps:$4 sm:$0xff]   ;;  %v328_v35 = vlaneseq }
  0xe1   :  { %3064 = vmatprep.subr.bf16.mxu1 %v3565_v51  ;;  %3078 = vmatprep.subr.bf16.mxu0 %v3567_v53  ;;  %v3572_v60 = vld [vmem:[%s4717_s1 + $0x538] ss:$20 sps:$4 sm:$0xff]   ;;  %v3577_v0 = vld [vmem:[%s4717_s1 + $0x4e8] ss:$20 sps:$4 sm:$0xff]   ;;  %v3581_v4 = vld [vmem:[%s4717_s1 + $0x6f0] ss:$20 sps:$4 sm:$0xff]  }
  0xe2   :  { %v3578_v1 = vld [vmem:[%s4717_s1 + $0x3a8] ss:$20 sps:$4 sm:$0xff]   ;;  %v3582_v5 = vld [vmem:[%s4717_s1 + $0x5b0] ss:$20 sps:$4 sm:$0xff]   ;;  %v3583_v7 = vld [vmem:[%s4717_s1 + $0x718] ss:$20 sps:$4 sm:$0xff]  }
  0xe3   :  { %2016 = vmatmul.mubr.bf16.vlgmr.msra.gmra.mrb[4].mxu0 %v3920_v8  ;;  %v3575_v8 = vld [vmem:[%s4717_s1 + $0x6a0] ss:$20 sps:$4 sm:$0xff]   ;;  %v3580_v3 = vld [vmem:[%s4717_s1 + $0x588] ss:$20 sps:$4 sm:$0xff]   ;;  %v3589_v6 = vld [vmem:[%s4717_s1 + $0x790] ss:$20 sps:$4 sm:$0xff]  }
  0xe4   :  { %3065 = vmatpush3.bf16.msra.mxu1 %v3566_v55  ;;  %3079 = vmatpush3.bf16.msra.mxu0 %v3568_v56  ;;  %v3590_v10 = vld [vmem:[%s4719_s3 + $0x40] sm:$0xff]   ;;  %v3584_v11 = vld [vmem:[%s4717_s1 + $0x5d8] ss:$20 sps:$4 sm:$0xff]   ;;  %v3587_v15 = vld [vmem:[%s4717_s1 + $0x768] ss:$20 sps:$4 sm:$0xff]   ;;  %v4613_v49 = vshrl.u32 %v328_v35, 7 }
  0xe5   :  { %3066 = vmatprep.subr.bf16.mxu1 %v3569_v57  ;;  %3080 = vmatprep.subr.bf16.mxu0 %v3571_v58  ;;  %v3585_v12 = vld [vmem:[%s4717_s1 + $0x740] ss:$20 sps:$4 sm:$0xff]   ;;  %v3592_v16 = vld [vmem:[%s4719_s3 + $0x48] sm:$0xff]   ;;  %v3596_v26 = vld [vmem:[%s4719_s3 + $0x58] sm:$0xff]  }
  0xe6   :  { %2095 = vmatprep.mubr.bf16.mxu0 %v4150_v20  ;;  %v3579_v20 = vld [vmem:[%s4717_s1 + $0x6c8] ss:$20 sps:$4 sm:$0xff]   ;;  %v3591_v14 = vld [vmem:[%s4719_s3] sm:$0xff]   ;;  %v3594_v21 = vld [vmem:[%s4719_s3 + $0x50] sm:$0xff]   ;;  %v330_v50 = vsub.s32 0, %v4613_v49  ;;  %v334_v53 = vsub.s32 1, %v4613_v49 }
  0xe7   :  { %v3588_v17 = vld [vmem:[%s4717_s1 + $0x628] ss:$20 sps:$4 sm:$0xff]   ;;  %v3598_v22 = vld [vmem:[%s4719_s3 + $0xc0] sm:$0xff]   ;;  %v3595_v23 = vld [vmem:[%s4719_s3 + $0x10] sm:$0xff]  }
  0xe8   :  { %3067 = vmatpush3.bf16.msra.mxu1 %v3570_v59  ;;  %3081 = vmatpush3.bf16.msra.mxu0 %v3572_v60  ;;  %v3593_v19 = vld [vmem:[%s4719_s3 + $0x8] sm:$0xff]   ;;  %v3599_v25 = vld [vmem:[%s4719_s3 + $0x80] sm:$0xff]   ;;  %v3597_v18 = vld [vmem:[%s4719_s3 + $0x18] sm:$0xff]  }
  0xe9   :  { %3068 = vmatprep.subr.bf16.mxu1 %v3573_v61  ;;  %3082 = vmatprep.subr.bf16.mxu0 %v3575_v8  ;;  %v3602_v27 = vld [vmem:[%s4719_s3 + $0xc8] sm:$0xff]   ;;  %v3600_v29 = vld [vmem:[%s4719_s3 + $0x60] sm:$0xff]   ;;  %v3606_v32 = vld [vmem:[%s4719_s3 + $0xd0] sm:$0xff]  }
  0xea   :  { %v3603_v28 = vld [vmem:[%s4719_s3 + $0x88] sm:$0xff]   ;;  %v3607_v33 = vld [vmem:[%s4719_s3 + $0x90] sm:$0xff]   ;;  %v3610_v36 = vld [vmem:[%s4719_s3 + $0xd8] sm:$0xff]  }
  0xeb   :  { %v3604_v30 = vld [vmem:[%s4719_s3 + $0x68] sm:$0xff]   ;;  %v3608_v52 = vld [vmem:[%s4719_s3 + $0x70] sm:$0xff]   ;;  %v3611_v2 = vld [vmem:[%s4719_s3 + $0x98] sm:$0xff]  }
  0xec   :  { %3069 = vmatpush3.bf16.msra.mxu1 %v3574_v62  ;;  %3083 = vmatpush3.bf16.msra.mxu0 %v3576_v63  ;;  %v3605_v31 = vld [vmem:[%s4719_s3 + $0x28] sm:$0xff]   ;;  %v3609_v34 = vld [vmem:[%s4719_s3 + $0x30] sm:$0xff]   ;;  %v3612_v37 = vld [vmem:[%s4719_s3 + $0x78] sm:$0xff]  }
  0xed   :  { %3070 = vmatprep.subr.bf16.mxu1 %v3577_v0  ;;  %3084 = vmatprep.subr.bf16.mxu0 %v3579_v20  ;;  %v3613_v38 = vld [vmem:[%s4719_s3 + $0x38] sm:$0xff]   ;;  %v3614_v39 = vld [vmem:[%s4719_s3 + $0xe0] sm:$0xff]   ;;  %v3616_v41 = vld [vmem:[%s4719_s3 + $0xe8] sm:$0xff]  }
  0xee   :  { %v3617_v42 = vld [vmem:[%s4719_s3 + $0xa8] sm:$0xff]   ;;  %v3618_v43 = vld [vmem:[%s4719_s3 + $0xf0] sm:$0xff]   ;;  %v3620_v45 = vld [vmem:[%s4719_s3 + $0xf8] sm:$0xff]  }
  0xef   :  { %v3619_v44 = vld [vmem:[%s4719_s3 + $0xb0] sm:$0xff]   ;;  %v3621_v46 = vld [vmem:[%s4719_s3 + $0xb8] sm:$0xff]   ;;  %v4619_v51 = vld [vmem:[%s4718_s2] sm:$0x1f] }
  0xf0   :  { %3071 = vmatpush3.bf16.msra.mxu1 %v3578_v1  ;;  %3085 = vmatpush3.bf16.msra.mxu0 %v3580_v3  ;;  %v331_v54 = vrot.slane %v4619_v51, %v330_v50  ;;  %v335_v55 = vrot.slane %v4619_v51, %v334_v53  ;;  %v3622_v1 = vld [vmem:[%s4719_s3 + $0x100] sm:$0xff]  }
  0xf1   :  { %3086 = vmatprep.subr.bf16.mxu0 %v3581_v4  ;;  %3164 = vmatprep.subr.bf16.mxu1 %v3664_v9  ;;  %v338_v4 = vsub.s32 2, %v4613_v49 }
  0xf3   :  { %2056 = vmatmul.mubr.bf16.vlgmr.msra.gmra.mrb[8].mxu1 %v4126_v13  ;;  %v3586_v13 = vld [vmem:[%s4717_s1 + $0x600] ss:$20 sps:$4 sm:$0xff]  }
  0xf4   :  { %3087 = vmatpush3.bf16.msra.mxu0 %v3582_v5  ;;  %3165 = vmatpush3.bf16.msra.mxu1 %v3589_v6  ;;  %v342_v5 = vsub.s32 3, %v4613_v49 }
  0xf5   :  { %3088 = vmatprep.subr.bf16.mxu0 %v3583_v7  ;;  %3166 = vmatprep.mubr.msk.bf16.mxu1 %vm3665_vm1, %v3664_v9 }
  0xf6   :  { %3102 = vmatprep.subr.bf16.mxu1 %v3590_v10  ;;  %v343_v6 = vrot.slane %v4619_v51, %v342_v5  ;;  %v3624_v10 = vld [vmem:[%s4719_s3 + $0x110] sm:$0xff]  }
  0xf8   :  { %3089 = vmatpush3.bf16.msra.mxu0 %v3584_v11 }
  0xf9   :  { %3090 = vmatprep.subr.bf16.mxu0 %v3585_v12 }
  0xfb   :  { %3167 = vmatmul.mubr.msk.bf16.vlgmr.msra.gmra.mrb[12].mxu1 %vm1651_vm0, %v4398_v40  ;;  %v3615_v40 = vld [vmem:[%s4719_s3 + $0xa0] sm:$0xff]  }
  0xfc   :  { %3091 = vmatpush3.bf16.msra.mxu0 %v3586_v13  ;;  %3103 = vmatpush3.bf16.msra.mxu1 %v3591_v14 }
  0xfd   :  { %3092 = vmatprep.subr.bf16.mxu0 %v3587_v15  ;;  %3104 = vmatprep.subr.bf16.mxu1 %v3592_v16 }
 0x100   :  { %3093 = vmatpush3.bf16.msra.mxu0 %v3588_v17  ;;  %3105 = vmatpush3.bf16.msra.mxu1 %v3593_v19  ;;  %v3625_v19 = vld [vmem:[%s4719_s3 + $0x118] sm:$0xff]  }
 0x101   :  { %3106 = vmatprep.subr.bf16.mxu1 %v3594_v21  ;;  %3124 = vmatprep.subr.bf16.mxu0 %v3598_v22 }
 0x103   :  { %2096 = vmatmul.mubr.bf16.vlgmr.msra.gmra.mrb[8].mxu0 %v4338_v24  ;;  %v3601_v24 = vld [vmem:[%s4719_s3 + $0x20] sm:$0xff]  }
 0x104   :  { %3107 = vmatpush3.bf16.msra.mxu1 %v3595_v23  ;;  %3125 = vmatpush3.bf16.msra.mxu0 %v3599_v25  ;;  %v3626_v23 = vld [vmem:[%s4719_s3 + $0x120] sm:$0xff]   ;;  %v3627_v25 = vld [vmem:[%s4719_s3 + $0x128] sm:$0xff]  }
 0x105   :  { %3108 = vmatprep.subr.bf16.mxu1 %v3596_v26  ;;  %3126 = vmatprep.subr.bf16.mxu0 %v3602_v27  ;;  %v3628_v27 = vld [vmem:[%s4719_s3 + $0x130] sm:$0xff]  }
 0x108   :  { %3109 = vmatpush3.bf16.msra.mxu1 %v3597_v18  ;;  %3127 = vmatpush3.bf16.msra.mxu0 %v3603_v28 }
 0x109   :  { %3110 = vmatprep.subr.bf16.mxu1 %v3600_v29  ;;  %3128 = vmatprep.subr.bf16.mxu0 %v3606_v32 }
 0x10c   :  { %3111 = vmatpush3.bf16.msra.mxu1 %v3601_v24  ;;  %3129 = vmatpush3.bf16.msra.mxu0 %v3607_v33 }
 0x10d   :  { %3112 = vmatprep.subr.bf16.mxu1 %v3604_v30  ;;  %3130 = vmatprep.subr.bf16.mxu0 %v3610_v36  ;;  %v3629_v30 = vld [vmem:[%s4719_s3 + $0x138] sm:$0xff]  }
 0x110   :  { %3113 = vmatpush3.bf16.msra.mxu1 %v3605_v31  ;;  %3131 = vmatpush3.bf16.msra.mxu0 %v3611_v2  ;;  %v346_v31 = vsub.s32 4, %v4613_v49 }
 0x111   :  { %3114 = vmatprep.subr.bf16.mxu1 %v3608_v52  ;;  %3132 = vmatprep.subr.bf16.mxu0 %v3614_v39 }
 0x112   :  { %v347_v32 = vrot.slane %v4619_v51, %v346_v31 }
 0x114   :  { %3115 = vmatpush3.bf16.msra.mxu1 %v3609_v34  ;;  %3133 = vmatpush3.bf16.msra.mxu0 %v3615_v40 }
 0x115   :  { %3116 = vmatprep.subr.bf16.mxu1 %v3612_v37  ;;  %3134 = vmatprep.subr.bf16.mxu0 %v3616_v41 }
 0x118   :  { %3117 = vmatpush3.bf16.msra.mxu1 %v3613_v38  ;;  %3135 = vmatpush3.bf16.msra.mxu0 %v3617_v42 }
 0x119   :  { %3170 = vmatprep.subr.bf16.mxu1 %v3664_v9  ;;  %3136 = vmatprep.subr.bf16.mxu0 %v3618_v43 }
 0x11c   :  { %3137 = vmatpush3.bf16.msra.mxu0 %v3619_v44 }
 0x11d   :  { %3138 = vmatprep.subr.bf16.mxu0 %v3620_v45 }
 0x120   :  { %3139 = vmatpush3.bf16.msra.mxu0 %v3621_v46 }
 0x121   :  { %3190 = vmatprep.subr.bf16.mxu0 %v3664_v9 }
 0x195   :  { %v1771_v56 = vpop.f32.mrb[0].mxu0 }
 0x196   :  { %v3210_v57 = vadd.f32 %v1771_v56, %v331_v54  ;;  %v1773_v58 = vpop.f32.mrb[1].mxu0  ;;  %v3630_v54 = vld [vmem:[%s4721_s5] sm:$0xff]   ;;  %v3632_v56 = vld [vmem:[%s4721_s5 + $0x10] sm:$0xff]  }
 0x197   :  { %v3212_v59 = vadd.f32 %v1773_v58, %v335_v55  ;;  %v1775_v60 = vpop.f32.mrb[2].mxu0  ;;  %v3631_v55 = vld [vmem:[%s4721_s5 + $0x8] sm:$0xff]   ;;  %v3634_v58 = vld [vmem:[%s4721_s5 + $0x20] sm:$0xff]  }
 0x198   :  { %v3211_v61 = vadd.f32 %v3210_v57, %v4421_v47  ;;  %v1776_v8 = vpop.f32.mrb[3].mxu0  ;;  %v3623_v47 = vld [vmem:[%s4719_s3 + $0x108] sm:$0xff]   ;;  %v3633_v57 = vld [vmem:[%s4721_s5 + $0x18] sm:$0xff]   ;;  %v3636_v60 = vld [vmem:[%s4721_s5 + $0x30] sm:$0xff]  }
 0x199   :  { %v3213_v62 = vadd.f32 %v3212_v59, %v4423_v48  ;;  %v339_v48 = vrot.slane %v4619_v51, %v338_v4  ;;  %v3635_v59 = vld [vmem:[%s4721_s5 + $0x28] sm:$0xff]  }
 0x19a   :  { %v2143_v63 = vmax.f32 %v3211_v61, 0.0  ;;  %v3637_v61 = vld [vmem:[%s4721_s5 + $0x38] sm:$0xff]  }
 0x19b   :  { %v2144_v0 = vmax.f32 %v3213_v62, 0.0 }
 0x19c   :  { %v2148_v3 = vpack.c.bf16 %v2143_v63, %v2143_v63 }
 0x19d   :  { %v2149_v20 = vpack.c.bf16 %v2144_v0, %v2144_v0 }
 0x19f   :  { %2512 = vmatprep.mubr.bf16.mxu1 %v2149_v20 }
 0x1a0   :  { %2513 = vmatmul.mubr.bf16.vlgmr.msra.gmra.mrb[16].mxu1 %v2148_v3 }
 0x1a1   :  { %3171 = vmatpush3.bf16.msra.mxu1 %v3622_v1  ;;  %3186 = vmatprep.mubr.msk.bf16.mxu1 %vm3665_vm1, %v3664_v9  ;;  %v2984_v1 = vld [vmem:[%s4720_s4] ss:$0 sm:$0xff]  ;;  %s3666_s4 = smov [#allocation2]  }
 0x1a2   :  { %3172 = vmatprep.subr.bf16.mxu1 %v3664_v9  ;;  %s2721_s13 = sshll.u32 %s3666_s4, 4  ;;  %s2722_s13 = int_to_ptr.vmem [resolvable:$true] %s2721_s13 }
 0x1a3   :  { %s3639_s14 = scalar_lea.vmem %s2722_s13, 128  ;;  %p3644_p1 = scmp.lt.s32.totalorder %s2722_s13, %s2722_s13 }
 0x1a4   :  { %p3640_p0 = scmp.ne.s32.totalorder %s2722_s13, %s3639_s14  ;;  %p3645_p2 = scmp.lt.s32.totalorder %s3639_s14, %s3639_s14 }
 0x1a5   :  { %3173 = vmatpush3.bf16.msra.mxu1 %v3623_v47 }
 0x1a6   :  { %v1976_v7 = vpop.f32.mrb[4].mxu1  ;;  %3174 = vmatprep.subr.bf16.mxu1 %v3664_v9  ;;  %p3646_p3 = por %p3645_p2, %p3644_p1 }
 0x1a7   :  { %v3214_v11 = vadd.f32 %v1976_v7, %v339_v48  ;;  %v1978_v12 = vpop.f32.mrb[5].mxu1 }
 0x1a8   :  { %v3215_v13 = vadd.f32 %v1978_v12, %v343_v6  ;;  %v1980_v14 = vpop.f32.mrb[6].mxu1  ;;  %p3647_p4 = pnand %p3646_p3, %p3640_p0 }
 0x1a9   :  { %v2145_v15 = vmax.f32 %v3214_v11, 0.0  ;;  %v1981_v16 = vpop.f32.mrb[7].mxu1  ;;  %3175 = vmatpush3.bf16.msra.mxu1 %v3624_v10 }
 0x1aa   :  { %v2146_v17 = vmax.f32 %v3215_v13, 0.0  ;;  %3176 = vmatprep.subr.bf16.mxu1 %v3664_v9  ;;  %v3025_v16 = vld [vmem:[%s4722_s6] ss:$0 sm:$0xff] }
 0x1ab   :  { %v2150_v22 = vpack.c.bf16 %v2145_v15, %v2145_v15 }
 0x1ac   :  { %v2151_v21 = vpack.c.bf16 %v2146_v17, %v2146_v17 }
 0x1ad   :  { %3177 = vmatpush3.bf16.msra.mxu1 %v3625_v19 }
 0x1ae   :  { %2552 = vmatprep.mubr.bf16.mxu0 %v2151_v21  ;;  %3178 = vmatprep.subr.bf16.mxu1 %v3664_v9 }
 0x1af   :  { %2553 = vmatmul.mubr.bf16.vlgmr.msra.gmra.mrb[12].mxu0 %v2150_v22 }
 0x1b0   :  { %3206 = vmatprep.mubr.msk.bf16.mxu0 %vm3665_vm1, %v3664_v9  ;;  %3191 = vmatpush3.bf16.msra.mxu0 %v3630_v54 }
 0x1b1   :  { %3179 = vmatpush3.bf16.msra.mxu1 %v3626_v23  ;;  %3192 = vmatprep.subr.bf16.mxu0 %v3664_v9 }
 0x1b2   :  { %3180 = vmatprep.subr.bf16.mxu1 %v3664_v9 }
 0x1b4   :  { %3193 = vmatpush3.bf16.msra.mxu0 %v3631_v55 }
 0x1b5   :  { %3181 = vmatpush3.bf16.msra.mxu1 %v3627_v25  ;;  %3194 = vmatprep.subr.bf16.mxu0 %v3664_v9 }
 0x1b6   :  { %v3050_v26 = vpop.f32.mrb[4].mxu0  ;;  %3182 = vmatprep.subr.bf16.mxu1 %v3664_v9 }
 0x1b7   :  { %v3051_v18 = vpop.f32.mrb[5].mxu0 }
 0x1b8   :  { %v3052_v28 = vadd.f32 %v3051_v18, %v3050_v26  ;;  %v3053_v29 = vpop.f32.mrb[6].mxu0  ;;  %3195 = vmatpush3.bf16.msra.mxu0 %v3632_v56 }
 0x1b9   :  { %v3054_v24 = vpop.f32.mrb[7].mxu0  ;;  %3183 = vmatpush3.bf16.msra.mxu1 %v3628_v27  ;;  %3196 = vmatprep.subr.bf16.mxu0 %v3664_v9 }
 0x1ba   :  { %3184 = vmatprep.subr.bf16.mxu1 %v3664_v9  ;;  %v2018_v34 = vadd.f32 %v3052_v28, %v347_v32 }
 0x1bc   :  { %3197 = vmatpush3.bf16.msra.mxu0 %v3633_v57 }
 0x1bd   :  { %3185 = vmatpush3.bf16.msra.mxu1 %v3629_v30  ;;  %3198 = vmatprep.subr.bf16.mxu0 %v3664_v9 }
 0x1c0   :  { %3199 = vmatpush3.bf16.msra.mxu0 %v3634_v58 }
 0x1c1   :  { %3200 = vmatprep.subr.bf16.mxu0 %v3664_v9 }
 0x1c4   :  { %3201 = vmatpush3.bf16.msra.mxu0 %v3635_v59 }
 0x1c5   :  { %3202 = vmatprep.subr.bf16.mxu0 %v3664_v9 }
 0x1c6   :  { %v3072_v33 = vpop.f32.mrb[8].mxu1 }
 0x1c7   :  { %v3073_v52 = vpop.f32.mrb[9].mxu1 }
 0x1c8   :  { %v3074_v36 = vadd.f32 %v3073_v52, %v3072_v33  ;;  %v3075_v2 = vpop.f32.mrb[10].mxu1  ;;  %3203 = vmatpush3.bf16.msra.mxu0 %v3636_v60 }
 0x1c9   :  { %v3076_v37 = vpop.f32.mrb[11].mxu1  ;;  %3204 = vmatprep.subr.bf16.mxu0 %v3664_v9 }
 0x1ca   :  { %v2058_v38 = vadd.f32 %v3074_v36, %v2018_v34 }
 0x1cc   :  { %3205 = vmatpush3.bf16.msra.mxu0 %v3637_v61 }
 0x1ce   :  { %v2137_v39 = vpop.f32.mrb[12].mxu1 }
 0x1cf   :  { %v3168_v40 = vpop.f32.mrb[13].mxu1 }
 0x1d0   :  { %v2140_v41 = vpop.f32.mrb[14].mxu1 }
 0x1d1   :  { %v3169_v42 = vpop.f32.mrb[15].mxu1 }
 0x1d6   :  { %v3094_v43 = vpop.f32.mrb[8].mxu0 }
 0x1d7   :  { %v3095_v44 = vpop.f32.mrb[9].mxu0 }
 0x1d8   :  { %v3096_v45 = vadd.f32 %v3095_v44, %v3094_v43  ;;  %v3097_v46 = vpop.f32.mrb[10].mxu0 }
 0x1d9   :  { %v3098_v35 = vpop.f32.mrb[11].mxu0 }
 0x1da   :  { %v2098_v50 = vadd.f32 %v3096_v45, %v2058_v38 }
 0x1dc   :  { %v2138_v49 = vadd.f32 %v2137_v39, %v2098_v50 }
 0x1de   :  { %v2147_v53 = vmax.f32 %v2138_v49, 0.0 }
 0x1e0   :  { %v2152_v51 = vpack.c.bf16 %v2147_v53, %v2147_v53 }
 0x1e2   :  { %3187 = vmatmul.mubr.bf16.vlgmr.msra.gmra.mrb[20].mxu1 %v2152_v51 }
 0x273   :  { %v3118_v8 = vpop.f32.mrb[16].mxu1 }
 0x274   :  { %v3119_v62 = vpop.f32.mrb[17].mxu1 }
 0x275   :  { %v3120_v63 = vadd.f32 %v3119_v62, %v3118_v8  ;;  %v3121_v0 = vpop.f32.mrb[18].mxu1 }
 0x276   :  { %v3122_v20 = vpop.f32.mrb[19].mxu1 }
 0x277   :  { %v2515_v5 = vadd.f32 %v3120_v63, %v2984_v1 }
 0x282   :  { %v3140_v3 = vpop.f32.mrb[12].mxu0 }
 0x283   :  { %v3141_v4 = vpop.f32.mrb[13].mxu0 }
 0x284   :  { %v3142_v47 = vadd.f32 %v3141_v4, %v3140_v3  ;;  %v3143_v48 = vpop.f32.mrb[14].mxu0 }
 0x285   :  { %v3144_v9 = vpop.f32.mrb[15].mxu0 }
 0x286   :  { %v2555_v6 = vadd.f32 %v3142_v47, %v2515_v5 }
 0x2b5   :  { %v2594_v7 = vpop.f32.mrb[20].mxu1 }
 0x2b6   :  { %v2595_v10 = vadd.f32 %v2594_v7, %v2555_v6  ;;  %v3188_v11 = vpop.f32.mrb[21].mxu1 }
 0x2b7   :  { %v2597_v12 = vpop.f32.mrb[22].mxu1 }
 0x2b8   :  { %v2600_v13 = vmax.f32 %v2595_v10, 0.0  ;;  %v3189_v14 = vpop.f32.mrb[23].mxu1 }
 0x2ba   :  { %v2601_v15 = vpack.c.bf16 %v2600_v13, %v2600_v13 }
 0x2bc   :  { %3207 = vmatmul.mubr.bf16.vlgmr.msra.gmra.mrb[16].mxu0 %v2601_v15 }
 0x38f   :  { %v2707_v17 = vpop.f32.mrb[16].mxu0 }
 0x390   :  { %v2708_v19 = vadd.f32 %v3025_v16, %v2707_v17  ;;  %v3208_v21 = vpop.f32.mrb[17].mxu0 }
 0x391   :  { %v2710_v22 = vpop.f32.mrb[18].mxu0 }
 0x392   :  { %v2713_v23 = vmax.f32 %v2708_v19, 0.0  ;;  %v3209_v25 = vpop.f32.mrb[19].mxu0 }
 0x394   :  { %2714 = vst [vmem:[#allocation2] sm:$0xff] %v2713_v23 }
 0x395   :  { %3650 = shalt.err (!%p3647_p4)
}
 0x396   :  { %s3651_s6 = scalar_lea.hbm %s4723_s7, 128 }
 0x397   :  { %p3652_p5 = scmp.ne.s32.totalorder %s4723_s7, %s3651_s6  ;;  %p3655_p6 = scmp.lt.u32.totalorder %s3651_s6, %s4723_s7 }
 0x399   :  { %p3657_p7 = pnand %p3655_p6, %p3652_p5 }
 0x39b   :  { %3660 = shalt.err (!%p3657_p7)
}
 0x39c   :  { %2724 = dma.vmem_to_hbm [thread:$0]  %s2722_s13, 128, %s4723_s7, [#allocation3]  }
 0x39d   :  { %3661 = dma.done.wait [#allocation3], 128  }
 0x39e   :  { %3662 = vsyncadd [#allocation3], 4294967168 }
 0x39f   :  { %2728 = vsyncpa [#allocation3], 1 }

</bundles_post_ra>
